<compile_context>
chip_gen: v7x
topology: tpu7x:2x2x1
jax: 0.10.0
libtpu: 0.0.40
codegen_flags: <defaults>
</compile_context>

<pallas_src>
import functools
import math

import jax
import jax.numpy as jnp
from jax.experimental import pallas as pl
from jax.experimental.pallas import tpu as pltpu


def _replicate_pe(pe_tile, n_rep):
    # (ts, D) -> (ts, n_rep*D); column b*D + d of flattened x picks pe[:, d].
    if n_rep == 1:
        return pe_tile
    return jnp.tile(pe_tile, (1, n_rep))


def _pe_add_kernel(seed_ref, x_ref, pe_ref, o_ref, *, n_rep):
    # Eval mode: dropout is identity. One full-tile add, one unmasked store.
    del seed_ref
    o_ref[...] = x_ref[...] + _replicate_pe(pe_ref[...], n_rep)


def _hash_u32(h):
    # lowbias32 finalizer: good avalanche, ~7 cheap VPU integer ops.
    h = h ^ (h >> 16)
    h = h * jnp.uint32(0x7FEB352D)
    h = h ^ (h >> 15)
    h = h * jnp.uint32(0x846CA68B)
    h = h ^ (h >> 16)
    return h


def _pe_add_dropout_kernel(seed_ref, x_ref, pe_ref, o_ref, *,
                           n_rep, dropout_p, tile_rows, row_width):
    # Train mode: inverted dropout, keep-prob (1 - p), kept values scaled.
    y = x_ref[...] + _replicate_pe(pe_ref[...], n_rep)

    # Counter-based mask: hash of (global element index, seed). Independent
    # across tiles and calls, identical for any tiling of the same array.
    # TODO(synk): on real TPU the hardware PRNG (pltpu.prng_random_bits) is a
    # hair cheaper per element, but it has no interpret/CPU lowering, so we
    # stay with the portable integer hash.
    rows = (jax.lax.broadcasted_iota(jnp.int32, y.shape, 0).astype(jnp.uint32)
            + (pl.program_id(0) * tile_rows).astype(jnp.uint32))
    cols = jax.lax.broadcasted_iota(jnp.int32, y.shape, 1).astype(jnp.uint32)
    idx = rows * jnp.uint32(row_width) + cols
    seed = seed_ref[0].astype(jnp.uint32) * jnp.uint32(0x9E3779B1)
    bits = _hash_u32(idx ^ seed)

    thresh = jnp.uint32(min(int(round(dropout_p * 2.0 ** 32)), 2 ** 32 - 1))
    keep = bits >= thresh                          # integer-domain keep test
    scale = jnp.asarray(1.0 / (1.0 - dropout_p), y.dtype)
    o_ref[...] = jnp.where(keep, y * scale, jnp.zeros_like(y))


def build_pe_table(max_len: int, d_model: int, dtype=jnp.float32) -> jax.Array:
    """Sin/cos positional-encoding table, shape [max_len, d_model]."""
    assert d_model % 2 == 0, "d_model must be even (sin/cos interleave)"
    position = jnp.arange(max_len, dtype=jnp.float32)[:, None]
    div_term = jnp.exp(
        jnp.arange(0, d_model, 2, dtype=jnp.float32) * (-math.log(10000.0) / d_model)
    )
    ang = position * div_term                       # [max_len, d_model // 2]
    pe = jnp.zeros((max_len, d_model), jnp.float32)
    pe = pe.at[:, 0::2].set(jnp.sin(ang))
    pe = pe.at[:, 1::2].set(jnp.cos(ang))
    return pe.astype(dtype)


def _pick_seq_tile(s: int, row_bytes: int) -> int:
    """Byte-budgeted sequence tile: multiple of 8 sublanes or the full axis."""
    budget = 1 << 20                                # ~1 MiB of x per tile
    ts = max(8, (budget // max(row_bytes, 1)) // 8 * 8)
    ts = min(ts, s)
    if ts >= s and s > 8:
        # Keep >= 2 grid steps so v7x's second TensorCore gets work.
        ts = max(8, (s // 2) // 8 * 8)
    if ts >= s:
        ts = s                                      # tiny sequence: whole axis
    return ts


def positional_encoding(
    x: jax.Array,
    pe: jax.Array,
    *,
    dropout_p: float = 0.1,
    train: bool = False,
    seed: int = 0,
) -> jax.Array:
    """Pallas equivalent of PositionalEncoding.forward.

    x  : [S, B, d_model]
    pe : [max_len, d_model] table from build_pe_table (max_len >= S)
    """
    s, b, d = x.shape
    assert pe.shape[0] >= s and pe.shape[1] == d, (pe.shape, x.shape)
    # NOTE: pe is cast to x.dtype (PyTorch keeps the buffer f32 and promotes
    # the add); this only differs in the low bits for bf16 activations.
    pe_s = pe[:s].astype(x.dtype)

    bd = b * d
    x2 = x.reshape(s, bd)                           # free: x is contiguous
    itemsize = x.dtype.itemsize
    row_bytes = bd * itemsize
    ts = _pick_seq_tile(s, row_bytes)
    grid = (pl.cdiv(s, ts),)

    if train and dropout_p > 0.0:
        kernel = functools.partial(
            _pe_add_dropout_kernel, n_rep=b, dropout_p=float(dropout_p),
            tile_rows=ts, row_width=bd)
    else:
        kernel = functools.partial(_pe_add_kernel, n_rep=b)

    seed_arr = jnp.asarray([seed], dtype=jnp.int32)

    grid_spec = pltpu.PrefetchScalarGridSpec(
        num_scalar_prefetch=1,                      # seed -> SMEM
        grid=grid,
        in_specs=[
            # x tile: (ts, B*D); lane-dense, full-extent last dim.
            pl.BlockSpec((ts, bd), lambda i, seed_ref: (i, 0)),
            # pe rows for the same sequence tile: (ts, D).
            pl.BlockSpec((ts, d), lambda i, seed_ref: (i, 0)),
        ],
        out_specs=pl.BlockSpec((ts, bd), lambda i, seed_ref: (i, 0)),
    )

    # VMEM accounting: double-buffered x + out, pe, plus in-kernel temporaries
    # (pe replica, hash/mask). Clamped so it also fits v7x's 64 MiB physical.
    tile_bytes = ts * row_bytes
    pe_tile_bytes = ts * d * itemsize
    vmem_limit = int(min(40 << 20,
                         max(16 << 20,
                             8 * tile_bytes + 4 * pe_tile_bytes + (2 << 20))))

    out2 = pl.pallas_call(
        kernel,
        grid_spec=grid_spec,
        out_shape=jax.ShapeDtypeStruct((s, bd), x.dtype),
        compiler_params=pltpu.CompilerParams(
            dimension_semantics=("parallel",),      # independent seq tiles
            vmem_limit_bytes=vmem_limit,
        ),
    )(seed_arr, x2, pe_s)
    return out2.reshape(s, b, d)


if __name__ == "__main__":
    seq, batch, d_model, max_len = 16, 4, 32, 64

    key = jax.random.PRNGKey(0)
    x = jax.random.normal(key, (seq, batch, d_model), dtype=jnp.float32)
    pe = build_pe_table(max_len, d_model)

    # Eval mode (dropout = identity): exact check against the reference.
    out = positional_encoding(x, pe, train=False)
    out = jax.block_until_ready(out)
    ref = x + pe[:seq][:, None, :]
    assert out.shape == (seq, batch, d_model), out.shape
    assert jnp.allclose(out, ref, atol=1e-6), "mismatch vs reference add"

    # Train mode: every element must be either dropped (0) or scaled by
    # 1/(1-p).  The RNG stream is an in-kernel counter hash, not PyTorch's
    # generator, so individual masks differ while dropout semantics match.
    p = 0.1
    out_tr = positional_encoding(x, pe, dropout_p=p, train=True, seed=123)
    out_tr = jax.block_until_ready(out_tr)
    scaled = ref / (1.0 - p)
    ok = jnp.isclose(out_tr, 0.0, atol=1e-6) | jnp.isclose(
        out_tr, scaled, rtol=1e-5, atol=1e-5
    )
    assert bool(jnp.all(ok)), "dropout output not in {0, y/(1-p)}"
    n_drop = int(jnp.sum(jnp.isclose(out_tr, 0.0, atol=1e-6)))
    assert 0 < n_drop < out_tr.size, "dropout mask degenerate (all kept/dropped)"

    print("KERNEL_OK")
</pallas_src>

<mosaic_0001>
module attributes {stable_mosaic.version = 11 : i64} {
  func.func @_pe_add_kernel(%arg0: i32, %arg1: memref<1xi32, #tpu.memory_space<smem>>, %arg2: memref<8x128xf32, #tpu.memory_space<vmem>>, %arg3: memref<8x32xf32, #tpu.memory_space<vmem>>, %arg4: memref<8x128xf32, #tpu.memory_space<vmem>>) attributes {dimension_semantics = [#tpu.dimension_semantics<parallel>], iteration_bounds = array<i64: 2>, scalar_prefetch = 1 : i64, scratch_operands = 0 : i64, tpu.core_type = #tpu.core_type<tc>, window_params = [{transform_indices = @transform_0, window_bounds = array<i64: 8, 128>}, {transform_indices = @transform_1, window_bounds = array<i64: 8, 32>}, {transform_indices = @transform_2, window_bounds = array<i64: 8, 128>}]} {
    %c0 = arith.constant 0 : index
    %c0_0 = arith.constant 0 : index
    %0 = vector.load %arg2[%c0, %c0_0] : memref<8x128xf32, #tpu.memory_space<vmem>>, vector<8x128xf32>
    %c0_1 = arith.constant 0 : index
    %c0_2 = arith.constant 0 : index
    %1 = vector.load %arg3[%c0_1, %c0_2] : memref<8x32xf32, #tpu.memory_space<vmem>>, vector<8x32xf32>
    %2 = tpu.concatenate %1, %1, %1, %1 in 1 : vector<8x32xf32>, vector<8x32xf32>, vector<8x32xf32>, vector<8x32xf32> -> vector<8x128xf32>
    %3 = arith.addf %0, %2 : vector<8x128xf32>
    %c0_3 = arith.constant 0 : index
    %c0_4 = arith.constant 0 : index
    %4 = vector.load %arg4[%c0_3, %c0_4] : memref<8x128xf32, #tpu.memory_space<vmem>>, vector<8x128xf32>
    tpu.vector_store %arg4[%c0_3, %c0_4], %3 {strides = array<i32>} : memref<8x128xf32, #tpu.memory_space<vmem>>, vector<8x128xf32>,
    return
  }
  func.func @transform_0(%arg0: i32, %arg1: memref<1xi32, #tpu.memory_space<smem>>) -> (i32, i32) {
    %c0_i32 = arith.constant 0 : i32
    %c0_i32_0 = arith.constant 0 : i32
    return %arg0, %c0_i32 : i32, i32
  }
  func.func @transform_1(%arg0: i32, %arg1: memref<1xi32, #tpu.memory_space<smem>>) -> (i32, i32) {
    %c0_i32 = arith.constant 0 : i32
    %c0_i32_0 = arith.constant 0 : i32
    return %arg0, %c0_i32 : i32, i32
  }
  func.func @transform_2(%arg0: i32, %arg1: memref<1xi32, #tpu.memory_space<smem>>) -> (i32, i32) {
    %c0_i32 = arith.constant 0 : i32
    %c0_i32_0 = arith.constant 0 : i32
    return %arg0, %c0_i32 : i32, i32
  }
}

</mosaic_0001>

<bundles_post_ra>
// kernel: tpu_custom_call.1
= control target key start
LH: loop header
LB: loop body
LE: loop exit
PB: predicated region body
PF: predicated region fallthrough
CT: control target
= control target key end

     0   :  { %9 = vsyncpa [#allocation5], 0  ;;  %s766_s0 = inlined_call_operand.<no memory space> [shape: s32[1], index: 0, kind: input, shape index: {}]   ;;  %s767_s1 = inlined_call_operand.hbm [shape: f32[16,128], index: 1, kind: input, shape index: {}]   ;;  %s768_s2 = inlined_call_operand.hbm [shape: f32[16,32], index: 2, kind: input, shape index: {}]   ;;  %s769_s3 = inlined_call_operand.hbm [shape: f32[16,128], index: 3, kind: output, shape index: {}]  }
   0x1   :  { %11 = vsyncpa [#allocation5 + $0x1], 0 }
   0x2   :  { %12 = vsyncpa [#allocation8], 0 }
   0x3   :  { %14 = vsyncpa [#allocation8 + $0x1], 0 }
   0x4   :  { %15 = vsyncpa [#allocation6], 0 }
   0x5   :  { %17 = vsyncpa [#allocation6 + $0x1], 0  ;;  %s552_s12 = smov 0   ;;  %s554_s13 = smov 0  }
   0x6   :  { %s556_s0 = smov 0   ;;  %s558_s14 = smov 0  }
   0x7 LB: > { %s573_s15 = sadd.s32 4294967295, %s524_s14   ;;  %s325_s16 = sadd.s32 4294967294, %s524_s14   ;;  %s524_s14 = sphi %s558_s14, %s788_s14   ;;  %s520_s0 = sphi %s556_s0, %s787_s0   ;;  %s516_s13 = sphi %s554_s13, %s786_s13   ;;  %s512_s12 = sphi %s552_s12, %s785_s12  }
   0x8   : > { %s577_s17 = sadd.s32 1, %s524_s14   ;;  %s30_s18 = sadd.s32 1, %s520_s0 }
   0x9   : > { %s27_s19 = ssub.s32 %s524_s14, %s577_s17  ;;  %p37_p0 = scmp.ne.s32.totalorder %s520_s0, %s516_s13 }
   0xa   : > { %p28_p1 = scmp.eq.s32.totalorder %s27_s19, 0  ;;  %p38_p2 = scmp.eq.s32.totalorder %s524_s14, 0 }
   0xb   : > { %p43_p3 = scmp.ne.s32.totalorder %s516_s13, %s512_s12  ;;  %p44_p4 = scmp.eq.s32.totalorder %s573_s15, 0 }
   0xc   : > { %s589_s20 = scalar_select %p28_p1, %s520_s0, %s30_s18  }
   0xd   : > { %p591_p5 = por %p38_p2, %p37_p0  ;;  %p595_p6 = por %p44_p4, %p43_p3 }
   0xe   : > { %p93_p7 = scmp.eq.s32.totalorder %s573_s15, 1  ;;  %p99_p8 = scmp.eq.s32.totalorder %s325_s16, 1 }
   0xf   : > { %s773_s22 = scalar_select %p595_p6, 1, 0 }
  0x10   : > { %p357_p10 = scmp.lt.s32.totalorder %s524_s14, 2  ;;  %p602_p11 = por %p93_p7, %p37_p0 }
  0x11   : > { %p606_p12 = por %p99_p8, %p43_p3  ;;  %s611_s25 = sand.u32 1, %s520_s0  }
  0x12   : > { %s774_s23 = scalar_select %p602_p11, 1, 0 }
  0x13   : > { %s775_s24 = scalar_select %p606_p12, 1, 0 }
  0x14   : > { %s329_s26 = sshll.u32 %s524_s14, 7  ;;  %s328_s27 = sshll.u32 %s611_s25, 3 }
  0x15   : > { %s620_s30 = scalar_lea.hbm %s767_s1, %s329_s26  ;;  %s123_s4 = scalar_lea.vmem [#allocation4], %s328_s27 }
  0x16   : > { %s130_s5 = sshll.u32 %s123_s4, 4  ;;  %p626_p13 = pnand %p357_p10, %p591_p5  ;;  %s630_s5 = int_to_ptr.vmem [resolvable:$true] %s130_s5 }
  0x17   : > { %s120_s7 = scalar_lea.sflag [#allocation5], %s611_s25  ;;  %s394_s8 = scalar_lea.hbm %s620_s30, 128 }
  0x18   : > { %p395_p2 = scmp.ne.s32.totalorder %s620_s30, %s394_s8  ;;  %p396_p3 = pneg %p626_p13 }
  0x19   : > { %s399_s11 = scalar_lea.hbm %s767_s1, 256  ;;  %p400_p5 = scmp.lt.u32.totalorder %s620_s30, %s767_s1 }
  0x1a   : > { %p397_p4 = pnand %p396_p3, %p395_p2  ;;  %p401_p8 = scmp.lt.u32.totalorder %s399_s11, %s394_s8 }
  0x1b   : > { %p403_p9 = scmp.lt.u32.totalorder %s394_s8, %s620_s30 }
  0x1c   : > { %p398_p7 = pneg %p397_p4  ;;  %p402_p10 = por %p401_p8, %p400_p5 }
  0x1e   : > { %p404_p0 = por %p403_p9, %p402_p10 }
  0x20   : > { %p405_p1 = pnand %p404_p0, %p398_p7 }
  0x22   : > { %408 = shalt.err (!%p405_p1)
}
  0x23   : > { %s409_s19 = scalar_lea.vmem %s630_s5, 128  ;;  %s526_s21 = smov [#allocation4]  }
  0x24   : > { %p410_p2 = scmp.ne.s32.totalorder %s630_s5, %s409_s19  ;;  %s414_s28 = sshll.u32 %s526_s21, 4  ;;  %s415_s28 = int_to_ptr.vmem [resolvable:$false] %s414_s28 }
  0x25   : > { %s416_s29 = scalar_lea.vmem %s415_s28, 256  ;;  %p417_p11 = scmp.lt.s32.totalorder %s630_s5, %s415_s28 }
  0x26   : > { %p412_p4 = pnand %p410_p2, %p396_p3  ;;  %p418_p5 = scmp.lt.s32.totalorder %s416_s29, %s409_s19 }
  0x28   : > { %p413_p12 = pneg %p412_p4  ;;  %p419_p8 = por %p418_p5, %p417_p11 }
  0x2a   : > { %p420_p9 = pnand %p419_p8, %p413_p12 }
  0x2c   : > { %423 = shalt.err (!%p420_p9)
}
  0x2d   : > { %349 = dma.hbm_to_vmem [thread:$0]  (!%p626_p13), %s620_s30, 128, %s630_s5, %s120_s7  }
  0x2e   : > { %p777_p0 = scmp.lt.s32.totalorder %s524_s14, 3  ;;  %p778_p1 = scmp.ge.s32.totalorder %s524_s14, 1 }
  0x2f   : > { %s673_s10 = scalar_lea.hbm %s768_s2, %s329_s26  ;;  %s141_s11 = scalar_lea.vmem [#allocation7], %s328_s27 }
  0x30   : > { %p664_p7 = pnand %p778_p1, %p777_p0  ;;  %s148_s16 = sshll.u32 %s141_s11, 4  ;;  %s149_s16 = int_to_ptr.vmem [resolvable:$true] %s148_s16 }
  0x31   : > { %s138_s30 = scalar_lea.sflag [#allocation8], %s611_s25  ;;  %s424_s5 = scalar_lea.hbm %s673_s10, 128 }
  0x32   : > { %s779_s4 = scalar_select %p664_p7, 1, 0 }
  0x33   : > { %p425_p11 = scmp.ne.s32.totalorder %s673_s10, %s424_s5  ;;  %s429_s26 = scalar_lea.hbm %s768_s2, 256 }
  0x34   : > { %p430_p2 = scmp.lt.u32.totalorder %s673_s10, %s768_s2  ;;  %p431_p4 = scmp.lt.u32.totalorder %s429_s26, %s424_s5 }
  0x35   : > { %p427_p12 = pnand %p425_p11, %p396_p3  ;;  %p433_p8 = scmp.lt.u32.totalorder %s424_s5, %s673_s10 }
  0x36   : > { %p432_p5 = por %p431_p4, %p430_p2 }
  0x37   : > { %p428_p10 = pneg %p427_p12 }
  0x38   : > { %p434_p9 = por %p433_p8, %p432_p5 }
  0x3a   : > { %p435_p0 = pnand %p434_p9, %p428_p10 }
  0x3c   : > { %438 = shalt.err (!%p435_p0)
}
  0x3d   : > { %s439_s25 = scalar_lea.vmem %s149_s16, 128  ;;  %s527_s27 = smov [#allocation7]  }
  0x3e   : > { %p440_p1 = scmp.ne.s32.totalorder %s149_s16, %s439_s25  ;;  %s444_s28 = sshll.u32 %s527_s27, 4  ;;  %s445_s28 = int_to_ptr.vmem [resolvable:$false] %s444_s28 }
  0x3f   : > { %s446_s29 = scalar_lea.vmem %s445_s28, 256  ;;  %p447_p6 = scmp.lt.s32.totalorder %s149_s16, %s445_s28 }
  0x40   : > { %p442_p11 = pnand %p440_p1, %p396_p3  ;;  %p448_p7 = scmp.lt.s32.totalorder %s446_s29, %s439_s25 }
  0x42   : > { %p443_p12 = pneg %p442_p11  ;;  %p449_p2 = por %p448_p7, %p447_p6 }
  0x44   : > { %p450_p4 = pnand %p449_p2, %p443_p12 }
  0x46   : > { %453 = shalt.err (!%p450_p4)
}
  0x47   : > { %352 = dma.hbm_to_vmem [thread:$0]  (!%p626_p13), %s673_s10, 128, %s149_s16, %s138_s30  }
  0x48   : > { %p780_p10 = scmp.ne.s32.totalorder %s779_s4, 0 }
  0x49   : > { %s700_s8 = sand.u32 (!%p780_p10), 1, %s516_s13   ;;  %p781_p6 = scmp.ne.s32.totalorder (!%p780_p10), %s773_s22, 0 }
  0x4a   : > { %157 = sbr.rel (%p780_p10) target bundleno = 222 (0xde), region = 28  ;;  %s703_s9 = sshll.u32 (!%p780_p10), %s700_s8, 3 }
  0x4b   : > { %s160_s11 = scalar_lea.sflag (!%p780_p10), [#allocation5], %s700_s8  ;;  %s163_s5 = scalar_lea.vmem (!%p780_p10), [#allocation4], %s703_s9 }
  0x51   : > { %499 = dma.done.wait (%p781_p6), %s160_s11, 128  }
  0x52   : > { %501 = vsyncadd (%p781_p6), %s160_s11, 4294967168  ;;  %s169_s6 = scalar_lea.sflag [#allocation8], %s700_s8  ;;  %s172_s4 = scalar_lea.vmem [#allocation7], %s703_s9 }
  0x53   : > { %503 = dma.done.wait (%p781_p6), %s169_s6, 128  }
  0x54   : > { %505 = vsyncadd (%p781_p6), %s169_s6, 4294967168  ;;  %v199_v0 = vld [vmem:[%s172_s4] sm:$0xff]  ;;  %s528_s10 = smov 32   ;;  %s529_s16 = smov 96   ;;  %vm210_vm0 = vcmask 261120   ;;  %vm212_vm1 = vcmask 523264  }
  0x55   : > { %201 = vrot.lane.b32.xlu0 %v199_v0, %s528_s10  ;;  %207 = vrot.lane.b32.xlu1 %v199_v0, %s529_s16  ;;  %s530_s30 = smov 64   ;;  %vm214_vm2 = vcmask 785408   ;;  %v198_v5 = vld [vmem:[%s163_s5] sm:$0xff]  ;;  %s337_s22 = sshll.u32 %s573_s15, 7 }
  0x56   : > { %s197_s7 = scalar_lea.vmem [#allocation9], %s703_s9  ;;  %s722_s21 = scalar_lea.hbm %s769_s3, %s337_s22 }
  0x57   : > { %s232_s18 = sshll.u32 %s197_s7, 4  ;;  %s219_s25 = scalar_lea.sflag [#allocation6], %s700_s8  ;;  %s724_s18 = int_to_ptr.vmem [resolvable:$true] %s232_s18 }
  0x58   : > { %s454_s27 = scalar_lea.vmem %s724_s18, 128  ;;  %p782_p3 = scmp.ne.s32.totalorder %s774_s23, 0 }
  0x59   : > { %204 = vrot.lane.b32.xlu0 %v199_v0, %s530_s30  ;;  %p455_p13 = scmp.ne.s32.totalorder %s724_s18, %s454_s27  ;;  %s531_s15 = smov [#allocation9]  }
  0x5a   : > { %s458_s28 = sshll.u32 %s531_s15, 4  ;;  %s459_s28 = int_to_ptr.vmem [resolvable:$false] %s458_s28 }
  0x5b   : > { %p456_p7 = pnand %p455_p13, %p782_p3  ;;  %s460_s29 = scalar_lea.vmem %s459_s28, 256 }
  0x5c   : > { %p461_p8 = scmp.lt.s32.totalorder %s724_s18, %s459_s28  ;;  %p462_p9 = scmp.lt.s32.totalorder %s460_s29, %s454_s27 }
  0x5d   : > { %p457_p5 = pneg %p456_p7 }
  0x5e   : > { %p463_p0 = por %p462_p9, %p461_p8 }
  0x60   : > { %p464_p1 = pnand %p463_p0, %p457_p5 }
  0xc7   : > { %v202_v1 = vpop.permute.xlu0 %201  ;;  %v208_v2 = vpop.permute.xlu1 %207 }
  0xc8   : > { %v211_v3 = vsel %vm210_vm0, %v199_v0, %v202_v1 }
  0xcb   : > { %v205_v4 = vpop.permute.xlu0 %204 }
  0xcc   : > { %v213_v6 = vsel %vm212_vm1, %v211_v3, %v205_v4 }
  0xcd   : > { %v215_v7 = vsel %vm214_vm2, %v213_v6, %v208_v2 }
  0xce   : > { %v216_v8 = vadd.f32 %v215_v7, %v198_v5 }
  0xd0   : > { %217 = vst [vmem:[%s197_s7] sm:$0xff] %v216_v8 }
  0xd1   : > { %467 = shalt.err (!%p464_p1)
}
  0xd2   : > { %s468_s8 = scalar_lea.hbm %s722_s21, 128  ;;  %s472_s5 = scalar_lea.hbm %s769_s3, 256 }
  0xd3   : > { %p469_p11 = scmp.ne.s32.totalorder %s722_s21, %s468_s8  ;;  %p473_p4 = scmp.lt.u32.totalorder %s722_s21, %s769_s3 }
  0xd4   : > { %p474_p10 = scmp.lt.u32.totalorder %s472_s5, %s468_s8  ;;  %p476_p13 = scmp.lt.u32.totalorder %s468_s8, %s722_s21 }
  0xd5   : > { %p470_p12 = pnand %p469_p11, %p782_p3 }
  0xd6   : > { %p475_p6 = por %p474_p10, %p473_p4 }
  0xd7   : > { %p471_p2 = pneg %p470_p12 }
  0xd8   : > { %p477_p7 = por %p476_p13, %p475_p6 }
  0xda   : > { %p478_p5 = pnand %p477_p7, %p471_p2 }
  0xdc   : > { %481 = shalt.err (!%p478_p5)
}
  0xdd   : > { %344 = dma.vmem_to_hbm [thread:$0]  (%p782_p3), %s724_s18, 128, %s722_s21, %s219_s25  }
  0xde PF: > { %s244_s10 = sand.u32 1, %s512_s12   ;;  %p783_p8 = scmp.ne.s32.totalorder %s775_s24, 0 }
  0xdf   : > { %p784_p9 = scmp.ge.s32.totalorder %s524_s14, 2  ;;  %s245_s16 = scalar_lea.sflag [#allocation6], %s244_s10 }
  0xe1   : > { %p354_p0 = pnand %p784_p9, %p783_p8 }
  0xe3   : > { %507 = dma.done.wait (!%p354_p0), %s245_s16, 128  }
  0xe4   : > { %509 = vsyncadd (!%p354_p0), %s245_s16, 4294967168  ;;  %p20_p1 = scmp.ge.s32.totalorder %s577_s17, 4   ;;  %s785_s12 = smov %s516_s13 }
  0xe5   : > { %s786_s13 = smov %s520_s0  ;;  %s787_s0 = smov %s589_s20 }
  0xe6   : > { %s788_s14 = smov %s577_s17  ;;  %22 = sbr.rel (!%p20_p1) target bundleno = 7 (0x7), region = 86 }
  0xed   :  { %250 = vsyncpa [#allocation5], 1 }
  0xee   :  { %252 = vsyncpa [#allocation5 + $0x1], 1 }
  0xef   :  { %253 = vsyncpa [#allocation8], 1 }
  0xf0   :  { %255 = vsyncpa [#allocation8 + $0x1], 1 }
  0xf1   :  { %256 = vsyncpa [#allocation6], 1 }
  0xf2   :  { %258 = vsyncpa [#allocation6 + $0x1], 1 }

</bundles_post_ra>
